<compile_context>
chip_gen: v5e
topology: v5e:2x2
jax: 0.10.0
libtpu: 0.0.40
codegen_flags: <defaults>
</compile_context>

<pallas_src>
import functools

import jax
import jax.numpy as jnp
from jax.experimental import pallas as pl
from jax.experimental.pallas import tpu as pltpu

BN_EPS = 1e-5


# ----------------------------- kernels ------------------------------------- #

def _conv_stats_kernel(x_ref, w_ref, y_ref, ps_ref, *, th, wout, copad):
    """Phase 1: 3x3 conv of one row-tile + per-channel partial BN stats.

    x_ref  : (1, (th+2)*wout, ckpad)  kx-concatenated channels, rows (h', w)
                                      flattened, 1-row halo on each side of h'.
    w_ref  : (3, ckpad, npad)         w_ref[ky][3*... see wrapper]  (MXU-lane-dense N).
    y_ref  : (1, th*wout, copad)      pre-BN conv output (narrow, real bytes only).
    ps_ref : (1, 2, copad)            row0 = sum(y), row1 = sum(y*y).
    """
    nrows = th * wout
    npad = w_ref.shape[2]
    acc = jnp.zeros((nrows, npad), jnp.float32)
    for ky in range(3):                                   # 3 matmuls, K = 3*Cin
        lhs = x_ref[0, pl.ds(ky * wout, nrows), :]        # (nrows, ckpad), aligned
        acc = acc + jnp.dot(lhs, w_ref[ky], preferred_element_type=jnp.float32)
    acc_c = acc[:, :copad]                                # drop MXU lane padding
    y_ref[0, :, :] = acc_c
    ps_ref[0, 0:1, :] = jnp.sum(acc_c, axis=0, keepdims=True)
    ps_ref[0, 1:2, :] = jnp.sum(acc_c * acc_c, axis=0, keepdims=True)


def _bn_relu_kernel(ss_ref, y_ref, o_ref, *, has_relu):
    """Phase 2: out = y*scale + shift (+ReLU). ss_ref row0 = scale, row1 = shift."""
    out = y_ref[0, :, :] * ss_ref[0:1, :] + ss_ref[1:2, :]
    if has_relu:
        out = jnp.maximum(out, 0.0)
    o_ref[0, :, :] = out.astype(o_ref.dtype)


# ----------------------------- helpers -------------------------------------- #

def _round_up(x, mult):
    return ((x + mult - 1) // mult) * mult


def _vmem_limit_bytes():
    """Chip-aware VMEM limit: ~half the physical capacity, 32 MiB floor, 96 MiB cap."""
    cap = 128 * 1024 * 1024
    try:
        info = pltpu.get_tpu_info()
        cap = int(getattr(info, "vmem_capacity_bytes", cap))
    except Exception:
        pass
    return max(32 << 20, min(cap // 2, 96 << 20))


def _pick_row_tile(n, h, w, ckpad, copad, npad, budget_bytes, max_rows=4096):
    """Largest th dividing h whose per-step footprint fits the VMEM budget;
    prefer choices giving an even grid (v7x: 2 TensorCores via "parallel")."""
    divs = [t for t in range(1, h + 1) if h % t == 0]

    def step_bytes(th):
        rows = th * w
        return 4 * (2 * ((th + 2) * w * ckpad + rows * copad + 2 * copad)  # dbl-buffered io
                    + 2 * 3 * ckpad * npad                                  # weights
                    + rows * npad)                                          # accumulator

    fits = [t for t in divs if t * w <= max_rows and step_bytes(t) <= budget_bytes]
    if not fits:
        fits = [min(divs)]
    even = [t for t in fits if (n * (h // t)) % 2 == 0]
    return max(even) if even else max(fits)


# ----------------------------- wrapper -------------------------------------- #

def conv_block_forward(x_nchw, conv_w, conv_b, bn_gamma, bn_beta, *,
                       has_relu=True, compute_dtype=jnp.float32):
    """ConvBlock forward: Conv2d(3x3, s1, p1, groups=1) + BatchNorm2d(batch stats) + ReLU.

    x: (N, Cin, H, W); conv_w: (Cout, Cin, 3, 3). Returns NCHW (PyTorch parity).
    conv_b is accepted but unused: training-mode BN mean subtraction cancels it
    exactly (it must be re-added if this is ever reused with running stats).
    """
    del conv_b
    n, cin, h, w = x_nchw.shape
    cout = conv_w.shape[0]
    m = n * h * w

    ck = 3 * cin                          # kx merged into the contraction
    ckpad = _round_up(ck, 8)              # MXU K: sublane/lane friendly
    copad = _round_up(cout, 8)            # HBM storage width: real bytes only
    npad = _round_up(cout, 128)           # MXU N: lane-dense matmul output

    vmem_limit = _vmem_limit_bytes()
    th = _pick_row_tile(n, h, w, ckpad, copad, npad, budget_bytes=(vmem_limit * 3) // 4)
    tiles_per_img = h // th
    num_tiles = n * tiles_per_img
    tm1 = th * w

    # --- activation prep: NHWC, pad, kx-concat along channels (single array) ---
    # TODO(synk): keep the surrounding model NHWC end-to-end to drop the NCHW<->NHWC
    # transposes; they are layout plumbing comparable in cost to the kernels here.
    x_nhwc = jnp.transpose(x_nchw, (0, 2, 3, 1)).astype(jnp.float32)      # (N,H,W,Cin)
    xp = jnp.pad(x_nhwc, ((0, 0), (1, 1), (1, 1), (0, 0)))                # (N,H+2,W+2,Cin)
    x_cat = jnp.concatenate([xp[:, :, kx:kx + w, :] for kx in range(3)], axis=-1)
    x_cat = jnp.pad(x_cat, ((0, 0), (0, 0), (0, 0), (0, ckpad - ck)))     # (N,H+2,W,ckpad)
    if tiles_per_img == 1:
        # full-height tiles: the halo'd slab is just the padded image (no gather pass).
        x_slab = x_cat.reshape(num_tiles, (th + 2) * w, ckpad)
    else:
        row_idx = (jnp.arange(tiles_per_img) * th)[:, None] + jnp.arange(th + 2)[None, :]
        x_slab = x_cat[:, row_idx].reshape(num_tiles, (th + 2) * w, ckpad)
    x_slab = x_slab.astype(compute_dtype)

    # --- weights: (Cout,Cin,3,3) -> (ky, kx*Cin + c, Cout), K/N zero-padded ---
    w_cat = jnp.transpose(conv_w.astype(jnp.float32), (2, 3, 1, 0)).reshape(3, ck, cout)
    w_cat = jnp.pad(w_cat, ((0, 0), (0, ckpad - ck), (0, npad - cout))).astype(compute_dtype)
    g_p = jnp.pad(bn_gamma.astype(jnp.float32), (0, copad - cout))
    b_p = jnp.pad(bn_beta.astype(jnp.float32), (0, copad - cout))

    ebytes = jnp.dtype(compute_dtype).itemsize

    # --- phase 1: conv + per-tile partial BN stats (parallel over row tiles) ---
    cost1 = pl.CostEstimate(
        flops=2 * m * ckpad * npad * 3,
        transcendentals=0,
        bytes_accessed=(num_tiles * (th + 2) * w * ckpad * ebytes
                        + 3 * ckpad * npad * ebytes
                        + m * copad * 4 + num_tiles * 2 * copad * 4))
    y_conv, partial = pl.pallas_call(
        functools.partial(_conv_stats_kernel, th=th, wout=w, copad=copad),
        out_shape=(jax.ShapeDtypeStruct((num_tiles, tm1, copad), jnp.float32),
                   jax.ShapeDtypeStruct((num_tiles, 2, copad), jnp.float32)),
        grid=(num_tiles,),
        in_specs=[pl.BlockSpec((1, (th + 2) * w, ckpad), lambda i: (i, 0, 0)),
                  pl.BlockSpec((3, ckpad, npad), lambda i: (0, 0, 0))],
        out_specs=(pl.BlockSpec((1, tm1, copad), lambda i: (i, 0, 0)),
                   pl.BlockSpec((1, 2, copad), lambda i: (i, 0, 0))),
        compiler_params=pltpu.CompilerParams(
            dimension_semantics=("parallel",),
            vmem_limit_bytes=vmem_limit),
        cost_estimate=cost1,
    )(x_slab, w_cat)

    # --- tiny reduction of per-tile partials -> per-channel scale / shift ---
    ch_sum = jnp.sum(partial[:, 0, :], axis=0)
    ch_sumsq = jnp.sum(partial[:, 1, :], axis=0)
    mean = ch_sum / m
    # TODO(synk): single-pass E[x^2]-E[x]^2 (clamped); switch to a shifted/Welford
    # reduction if production conv outputs can have |mean| >> std.
    var = jnp.maximum(ch_sumsq / m - mean * mean, 0.0)
    inv_std = jax.lax.rsqrt(var + BN_EPS)
    scale = g_p * inv_std
    shift = b_p - mean * scale
    ss = jnp.stack([scale, shift])                       # (2, copad)

    # --- phase 2: normalize + affine + ReLU, written in place over y_conv ---
    cost2 = pl.CostEstimate(flops=3 * m * copad, transcendentals=0,
                            bytes_accessed=2 * m * copad * 4 + 2 * copad * 4)
    out_y = pl.pallas_call(
        functools.partial(_bn_relu_kernel, has_relu=has_relu),
        out_shape=jax.ShapeDtypeStruct((num_tiles, tm1, copad), jnp.float32),
        grid=(num_tiles,),
        in_specs=[pl.BlockSpec((2, copad), lambda i: (0, 0)),
                  pl.BlockSpec((1, tm1, copad), lambda i: (i, 0, 0))],
        out_specs=pl.BlockSpec((1, tm1, copad), lambda i: (i, 0, 0)),
        input_output_aliases={1: 0},                      # reuse y_conv's HBM buffer
        compiler_params=pltpu.CompilerParams(
            dimension_semantics=("parallel",),
            vmem_limit_bytes=vmem_limit),
        cost_estimate=cost2,
    )(ss, y_conv)

    # (num_tiles, tm1, copad) -> (N, H, W, Cout) -> NCHW
    out = out_y.reshape(n, h, w, copad)
    if copad != cout:
        out = out[..., :cout]
    return jnp.transpose(out, (0, 3, 1, 2))


# ----------------------------- reference & test ----------------------------- #

def _reference(x_nchw, conv_w, conv_b, bn_gamma, bn_beta, has_relu=True):
    y = jax.lax.conv_general_dilated(
        x_nchw.astype(jnp.float32), conv_w.astype(jnp.float32),
        window_strides=(1, 1), padding=((1, 1), (1, 1)),
        dimension_numbers=("NCHW", "OIHW", "NCHW"))
    y = y + conv_b.reshape(1, -1, 1, 1)
    mean = jnp.mean(y, axis=(0, 2, 3), keepdims=True)
    var = jnp.mean((y - mean) ** 2, axis=(0, 2, 3), keepdims=True)
    y = (y - mean) * jax.lax.rsqrt(var + BN_EPS)
    y = y * bn_gamma.reshape(1, -1, 1, 1) + bn_beta.reshape(1, -1, 1, 1)
    return jnp.maximum(y, 0.0) if has_relu else y


if __name__ == "__main__":
    # ConvBlock(bottom=4, nout=8, kernel_size=3, stride=1, padding=1, bias=True)
    N, CIN, COUT, H, W = 2, 4, 8, 16, 16

    key = jax.random.PRNGKey(0)
    k_x, k_w, k_b = jax.random.split(key, 3)
    x = jax.random.normal(k_x, (N, CIN, H, W), dtype=jnp.float32)
    conv_w = jax.random.normal(k_w, (COUT, CIN, 3, 3), dtype=jnp.float32) * 0.1
    conv_b = jax.random.normal(k_b, (COUT,), dtype=jnp.float32) * 0.1
    bn_gamma = jnp.ones((COUT,), dtype=jnp.float32)   # nn.BatchNorm2d default init
    bn_beta = jnp.zeros((COUT,), dtype=jnp.float32)

    fwd = jax.jit(functools.partial(conv_block_forward, has_relu=True))
    out = jax.block_until_ready(fwd(x, conv_w, conv_b, bn_gamma, bn_beta))
    ref = jax.block_until_ready(_reference(x, conv_w, conv_b, bn_gamma, bn_beta, True))

    assert out.shape == (N, COUT, H, W), out.shape
    max_err = float(jnp.max(jnp.abs(out - ref)))
    assert max_err < 1e-4, f"mismatch vs reference: max |err| = {max_err}"

    print("KERNEL_OK")
</pallas_src>

<mosaic_0001>
module attributes {stable_mosaic.version = 11 : i64} {
  func.func @_conv_stats_kernel(%arg0: i32, %arg1: memref<1x288x16xf32, #tpu.memory_space<vmem>>, %arg2: memref<3x16x128xf32, #tpu.memory_space<vmem>>, %arg3: memref<1x256x8xf32, #tpu.memory_space<vmem>>, %arg4: memref<1x2x8xf32, #tpu.memory_space<vmem>>) attributes {dimension_semantics = [#tpu.dimension_semantics<parallel>], iteration_bounds = array<i64: 2>, scalar_prefetch = 0 : i64, scratch_operands = 0 : i64, tpu.core_type = #tpu.core_type<tc>, window_params = [{transform_indices = @transform_0, window_bounds = array<i64: 1, 288, 16>}, {pipeline_mode = #tpu.pipeline_mode<synchronous>, transform_indices = @transform_1, window_bounds = array<i64: 3, 16, 128>}, {transform_indices = @transform_2, window_bounds = array<i64: 1, 256, 8>}, {transform_indices = @transform_3, window_bounds = array<i64: 1, 2, 8>}]} {
    %cst = arith.constant 0.000000e+00 : f32
    %0 = vector.broadcast %cst : f32 to vector<256x128xf32>
    %c0 = arith.constant 0 : index
    %c0_0 = arith.constant 0 : index
    %c0_1 = arith.constant 0 : index
    %1 = vector.load %arg1[%c0, %c0_0, %c0_1] : memref<1x288x16xf32, #tpu.memory_space<vmem>>, vector<1x256x16xf32>
    %2 = vector.shape_cast %1 : vector<1x256x16xf32> to vector<256x16xf32>
    %c0_2 = arith.constant 0 : index
    %c0_3 = arith.constant 0 : index
    %c0_4 = arith.constant 0 : index
    %3 = vector.load %arg2[%c0_2, %c0_3, %c0_4] : memref<3x16x128xf32, #tpu.memory_space<vmem>>, vector<1x16x128xf32>
    %4 = vector.shape_cast %3 : vector<1x16x128xf32> to vector<16x128xf32>
    %cst_5 = arith.constant dense<0.000000e+00> : vector<256x128xf32>
    %5 = tpu.matmul %2, %4, %cst_5 {dimension_numbers = #tpu.dot_dimension_numbers<[1], [0], [0], [1], [0, 0, 1, 1], [], []>} : vector<256x16xf32>, vector<16x128xf32>, vector<256x128xf32> -> vector<256x128xf32>
    %6 = arith.addf %0, %5 : vector<256x128xf32>
    %c0_6 = arith.constant 0 : index
    %c16 = arith.constant 16 : index
    %c0_7 = arith.constant 0 : index
    %7 = vector.load %arg1[%c0_6, %c16, %c0_7] : memref<1x288x16xf32, #tpu.memory_space<vmem>>, vector<1x256x16xf32>
    %8 = vector.shape_cast %7 : vector<1x256x16xf32> to vector<256x16xf32>
    %c1 = arith.constant 1 : index
    %c0_8 = arith.constant 0 : index
    %c0_9 = arith.constant 0 : index
    %9 = vector.load %arg2[%c1, %c0_8, %c0_9] : memref<3x16x128xf32, #tpu.memory_space<vmem>>, vector<1x16x128xf32>
    %10 = vector.shape_cast %9 : vector<1x16x128xf32> to vector<16x128xf32>
    %cst_10 = arith.constant dense<0.000000e+00> : vector<256x128xf32>
    %11 = tpu.matmul %8, %10, %cst_10 {dimension_numbers = #tpu.dot_dimension_numbers<[1], [0], [0], [1], [0, 0, 1, 1], [], []>} : vector<256x16xf32>, vector<16x128xf32>, vector<256x128xf32> -> vector<256x128xf32>
    %12 = arith.addf %6, %11 : vector<256x128xf32>
    %c0_11 = arith.constant 0 : index
    %c32 = arith.constant 32 : index
    %c0_12 = arith.constant 0 : index
    %13 = vector.load %arg1[%c0_11, %c32, %c0_12] : memref<1x288x16xf32, #tpu.memory_space<vmem>>, vector<1x256x16xf32>
    %14 = vector.shape_cast %13 : vector<1x256x16xf32> to vector<256x16xf32>
    %c2 = arith.constant 2 : index
    %c0_13 = arith.constant 0 : index
    %c0_14 = arith.constant 0 : index
    %15 = vector.load %arg2[%c2, %c0_13, %c0_14] : memref<3x16x128xf32, #tpu.memory_space<vmem>>, vector<1x16x128xf32>
    %16 = vector.shape_cast %15 : vector<1x16x128xf32> to vector<16x128xf32>
    %cst_15 = arith.constant dense<0.000000e+00> : vector<256x128xf32>
    %17 = tpu.matmul %14, %16, %cst_15 {dimension_numbers = #tpu.dot_dimension_numbers<[1], [0], [0], [1], [0, 0, 1, 1], [], []>} : vector<256x16xf32>, vector<16x128xf32>, vector<256x128xf32> -> vector<256x128xf32>
    %18 = arith.addf %12, %17 : vector<256x128xf32>
    %19 = vector.extract_strided_slice %18 {offsets = [0, 0], sizes = [256, 8], strides = [1, 1]} : vector<256x128xf32> to vector<256x8xf32>
    %c0_16 = arith.constant 0 : index
    %c0_17 = arith.constant 0 : index
    %c0_18 = arith.constant 0 : index
    %20 = vector.load %arg3[%c0_16, %c0_17, %c0_18] : memref<1x256x8xf32, #tpu.memory_space<vmem>>, vector<1x256x8xf32>
    %21 = vector.shape_cast %20 : vector<1x256x8xf32> to vector<256x8xf32>
    %22 = vector.shape_cast %19 : vector<256x8xf32> to vector<1x256x8xf32>
    tpu.vector_store %arg3[%c0_16, %c0_17, %c0_18], %22 {strides = array<i32>} : memref<1x256x8xf32, #tpu.memory_space<vmem>>, vector<1x256x8xf32>,
    %cst_19 = arith.constant dense<0.000000e+00> : vector<8xf32>
    %23 = vector.multi_reduction <add>, %19, %cst_19 [0] : vector<256x8xf32> to vector<8xf32>
    %24 = vector.shape_cast %23 : vector<8xf32> to vector<1x8xf32>
    %c0_20 = arith.constant 0 : index
    %c0_21 = arith.constant 0 : index
    %c0_22 = arith.constant 0 : index
    %25 = vector.load %arg4[%c0_20, %c0_21, %c0_22] : memref<1x2x8xf32, #tpu.memory_space<vmem>>, vector<1x1x8xf32>
    %26 = vector.shape_cast %25 : vector<1x1x8xf32> to vector<1x8xf32>
    %27 = vector.shape_cast %24 : vector<1x8xf32> to vector<1x1x8xf32>
    tpu.vector_store %arg4[%c0_20, %c0_21, %c0_22], %27 {strides = array<i32>} : memref<1x2x8xf32, #tpu.memory_space<vmem>>, vector<1x1x8xf32>,
    %28 = arith.mulf %19, %19 : vector<256x8xf32>
    %cst_23 = arith.constant dense<0.000000e+00> : vector<8xf32>
    %29 = vector.multi_reduction <add>, %28, %cst_23 [0] : vector<256x8xf32> to vector<8xf32>
    %30 = vector.shape_cast %29 : vector<8xf32> to vector<1x8xf32>
    %c0_24 = arith.constant 0 : index
    %c1_25 = arith.constant 1 : index
    %c0_26 = arith.constant 0 : index
    %31 = vector.load %arg4[%c0_24, %c1_25, %c0_26] : memref<1x2x8xf32, #tpu.memory_space<vmem>>, vector<1x1x8xf32>
    %32 = vector.shape_cast %31 : vector<1x1x8xf32> to vector<1x8xf32>
    %33 = vector.shape_cast %30 : vector<1x8xf32> to vector<1x1x8xf32>
    tpu.vector_store %arg4[%c0_24, %c1_25, %c0_26], %33 {strides = array<i32>} : memref<1x2x8xf32, #tpu.memory_space<vmem>>, vector<1x1x8xf32>,
    return
  }
  func.func @transform_0(%arg0: i32) -> (i32, i32, i32) {
    %c0_i32 = arith.constant 0 : i32
    %c0_i32_0 = arith.constant 0 : i32
    %c0_i32_1 = arith.constant 0 : i32
    return %arg0, %c0_i32, %c0_i32_0 : i32, i32, i32
  }
  func.func @transform_1(%arg0: i32) -> (i32, i32, i32) {
    %c0_i32 = arith.constant 0 : i32
    %c0_i32_0 = arith.constant 0 : i32
    %c0_i32_1 = arith.constant 0 : i32
    %c0_i32_2 = arith.constant 0 : i32
    return %c0_i32, %c0_i32_0, %c0_i32_1 : i32, i32, i32
  }
  func.func @transform_2(%arg0: i32) -> (i32, i32, i32) {
    %c0_i32 = arith.constant 0 : i32
    %c0_i32_0 = arith.constant 0 : i32
    %c0_i32_1 = arith.constant 0 : i32
    return %arg0, %c0_i32, %c0_i32_0 : i32, i32, i32
  }
  func.func @transform_3(%arg0: i32) -> (i32, i32, i32) {
    %c0_i32 = arith.constant 0 : i32
    %c0_i32_0 = arith.constant 0 : i32
    %c0_i32_1 = arith.constant 0 : i32
    return %arg0, %c0_i32, %c0_i32_0 : i32, i32, i32
  }
}

module attributes {stable_mosaic.version = 11 : i64} {
  func.func @_bn_relu_kernel(%arg0: i32, %arg1: memref<2x8xf32, #tpu.memory_space<vmem>>, %arg2: memref<1x256x8xf32, #tpu.memory_space<vmem>>, %arg3: memref<1x256x8xf32, #tpu.memory_space<vmem>>) attributes {dimension_semantics = [#tpu.dimension_semantics<parallel>], iteration_bounds = array<i64: 2>, scalar_prefetch = 0 : i64, scratch_operands = 0 : i64, tpu.core_type = #tpu.core_type<tc>, window_params = [{pipeline_mode = #tpu.pipeline_mode<synchronous>, transform_indices = @transform_0, window_bounds = array<i64: 2, 8>}, {transform_indices = @transform_1, window_bounds = array<i64: 1, 256, 8>}, {transform_indices = @transform_2, window_bounds = array<i64: 1, 256, 8>}]} {
    %c0 = arith.constant 0 : index
    %c0_0 = arith.constant 0 : index
    %c0_1 = arith.constant 0 : index
    %0 = vector.load %arg2[%c0, %c0_0, %c0_1] : memref<1x256x8xf32, #tpu.memory_space<vmem>>, vector<1x256x8xf32>
    %1 = vector.shape_cast %0 : vector<1x256x8xf32> to vector<256x8xf32>
    %c0_2 = arith.constant 0 : index
    %c0_3 = arith.constant 0 : index
    %2 = vector.load %arg1[%c0_2, %c0_3] : memref<2x8xf32, #tpu.memory_space<vmem>>, vector<1x8xf32>
    %3 = vector.broadcast %2 : vector<1x8xf32> to vector<256x8xf32>
    %4 = arith.mulf %1, %3 : vector<256x8xf32>
    %c1 = arith.constant 1 : index
    %c0_4 = arith.constant 0 : index
    %5 = vector.load %arg1[%c1, %c0_4] : memref<2x8xf32, #tpu.memory_space<vmem>>, vector<1x8xf32>
    %6 = vector.broadcast %5 : vector<1x8xf32> to vector<256x8xf32>
    %7 = arith.addf %4, %6 : vector<256x8xf32>
    %cst = arith.constant 0.000000e+00 : f32
    %8 = vector.broadcast %cst : f32 to vector<256x8xf32>
    %9 = arith.maximumf %7, %8 : vector<256x8xf32>
    %c0_5 = arith.constant 0 : index
    %c0_6 = arith.constant 0 : index
    %c0_7 = arith.constant 0 : index
    %10 = vector.load %arg3[%c0_5, %c0_6, %c0_7] : memref<1x256x8xf32, #tpu.memory_space<vmem>>, vector<1x256x8xf32>
    %11 = vector.shape_cast %10 : vector<1x256x8xf32> to vector<256x8xf32>
    %12 = vector.shape_cast %9 : vector<256x8xf32> to vector<1x256x8xf32>
    tpu.vector_store %arg3[%c0_5, %c0_6, %c0_7], %12 {strides = array<i32>} : memref<1x256x8xf32, #tpu.memory_space<vmem>>, vector<1x256x8xf32>,
    return
  }
  func.func @transform_0(%arg0: i32) -> (i32, i32) {
    %c0_i32 = arith.constant 0 : i32
    %c0_i32_0 = arith.constant 0 : i32
    %c0_i32_1 = arith.constant 0 : i32
    return %c0_i32, %c0_i32_0 : i32, i32
  }
  func.func @transform_1(%arg0: i32) -> (i32, i32, i32) {
    %c0_i32 = arith.constant 0 : i32
    %c0_i32_0 = arith.constant 0 : i32
    %c0_i32_1 = arith.constant 0 : i32
    return %arg0, %c0_i32, %c0_i32_0 : i32, i32, i32
  }
  func.func @transform_2(%arg0: i32) -> (i32, i32, i32) {
    %c0_i32 = arith.constant 0 : i32
    %c0_i32_0 = arith.constant 0 : i32
    %c0_i32_1 = arith.constant 0 : i32
    return %arg0, %c0_i32, %c0_i32_0 : i32, i32, i32
  }
}

</mosaic_0001>

<bundles_post_ra>
// kernel: conv_block_forward.3
= control target key start
LH: loop header
LB: loop body
LE: loop exit
PB: predicated region body
PF: predicated region fallthrough
CT: control target
= control target key end

     0   :  { %s410_s9 = smov 0   ;;  %s638_s0 = inlined_call_operand.vmem [shape: f32[2,8], index: 0, kind: input, shape index: {}]   ;;  %s639_s1 = inlined_call_operand.vmem [shape: f32[2,256,8], index: 1, kind: input, shape index: {}, may-alias: {1,2}]   ;;  %s640_s2 = inlined_call_operand.vmem [shape: f32[2,256,8], index: 2, kind: output, shape index: {}, may-alias: {1,2}]  }
   0x1 LB: > { %s364_s10 = sadd.s32 4294967295, %s393_s9   ;;  %p368_p0 = scmp.ge.s32.totalorder %s393_s9, 1  ;;  %s393_s9 = sphi %s410_s9, %s12_s9  }
   0x2   : > { %p112_p1 = scmp.lt.s32.totalorder %s393_s9, 3 }
   0x4   : > { %p113_p2 = pnand %p368_p0, %p112_p1 }
   0x5   : > { %p134_p3 = scmp.lt.s32.totalorder (!%p113_p2), %s364_s10, 1 }
   0x6   : > { %116 = sbr.rel (%p113_p2) target bundleno = 57 (0x39), region = 28 }
   0xb   : > { %s642_s10 = smov (!%p134_p3, %s364_s10), 1  ;;  %v423_v0 = vld [vmem:[%s638_s0] ss:$0 sm:$0xff]  ;;  %v436_v1 = vld [vmem:[%s638_s0 + $0x1] ss:$0 sm:$0xff]  ;;  %vm276_vm0 = vcmask 64512  }
   0xc   : > { %s375_s13 = sshll.u32 %s642_s10, 8 }
   0xd   : > { %s431_s16 = scalar_lea.vmem %s639_s1, %s375_s13  ;;  %s471_s21 = scalar_lea.vmem %s640_s2, %s375_s13 }
   0xe   : > { %v144_v2 = vld [vmem:[%s431_s16] sm:$0xff]  ;;  %v145_v3 = vld [vmem:[%s431_s16 + $0x8] sm:$0xff]  ;;  %v146_v4 = vld [vmem:[%s431_s16 + $0x10] sm:$0xff] }
   0xf   : > { %v147_v5 = vld [vmem:[%s431_s16 + $0x18] sm:$0xff]  ;;  %v148_v6 = vld [vmem:[%s431_s16 + $0x20] sm:$0xff]  ;;  %v149_v7 = vld [vmem:[%s431_s16 + $0x28] sm:$0xff]  ;;  %v178_v8 = vmul.f32 %v423_v0, %v144_v2  ;;  %v179_v9 = vmul.f32 %v423_v0, %v145_v3  ;;  %v180_v10 = vmul.f32 %v423_v0, %v146_v4 }
  0x10   : > { %v150_v11 = vld [vmem:[%s431_s16 + $0x30] sm:$0xff]  ;;  %v181_v12 = vmul.f32 %v423_v0, %v147_v5  ;;  %v151_v13 = vld [vmem:[%s431_s16 + $0x38] sm:$0xff]  ;;  %v182_v15 = vmul.f32 %v423_v0, %v148_v6  ;;  %v152_v16 = vld [vmem:[%s431_s16 + $0x40] sm:$0xff]  ;;  %v183_v18 = vmul.f32 %v423_v0, %v149_v7 }
  0x11   : > { %v212_v14 = vadd.f32 %v436_v1, %v178_v8  ;;  %v213_v17 = vadd.f32 %v436_v1, %v179_v9  ;;  %v153_v19 = vld [vmem:[%s431_s16 + $0x48] sm:$0xff]  ;;  %v214_v20 = vadd.f32 %v436_v1, %v180_v10  ;;  %v184_v21 = vmul.f32 %v423_v0, %v150_v11  ;;  %v154_v22 = vld [vmem:[%s431_s16 + $0x50] sm:$0xff]  ;;  %v155_v25 = vld [vmem:[%s431_s16 + $0x58] sm:$0xff] }
  0x12   : > { %v215_v23 = vadd.f32 %v436_v1, %v181_v12  ;;  %v185_v24 = vmul.f32 %v423_v0, %v151_v13  ;;  %v156_v26 = vld [vmem:[%s431_s16 + $0x60] sm:$0xff]  ;;  %v157_v27 = vld [vmem:[%s431_s16 + $0x68] sm:$0xff]  ;;  %v216_v29 = vadd.f32 %v436_v1, %v182_v15  ;;  %v186_v30 = vmul.f32 %v423_v0, %v152_v16  ;;  %v158_v31 = vld [vmem:[%s431_s16 + $0x70] sm:$0xff] }
  0x13   : > { %v244_v28 = vmax.f32 %v212_v14, 0.0  ;;  %v159_v32 = vld [vmem:[%s431_s16 + $0x78] sm:$0xff]  ;;  %v160_v33 = vld [vmem:[%s431_s16 + $0x80] sm:$0xff]  ;;  %v161_v34 = vld [vmem:[%s431_s16 + $0x88] sm:$0xff]  ;;  %v245_v43 = vmax.f32 %v213_v17, 0.0  ;;  %v217_v44 = vadd.f32 %v436_v1, %v183_v18  ;;  %v187_v45 = vmul.f32 %v423_v0, %v153_v19 }
  0x14   : > { %v162_v35 = vld [vmem:[%s431_s16 + $0x90] sm:$0xff]  ;;  %v163_v36 = vld [vmem:[%s431_s16 + $0x98] sm:$0xff]  ;;  %v164_v37 = vld [vmem:[%s431_s16 + $0xa0] sm:$0xff]  ;;  %v246_v49 = vmax.f32 %v214_v20, 0.0  ;;  %v218_v50 = vadd.f32 %v436_v1, %v184_v21  ;;  %v188_v51 = vmul.f32 %v423_v0, %v154_v22  ;;  %v247_v55 = vmax.f32 %v215_v23, 0.0 }
  0x15   : > { %v165_v38 = vld [vmem:[%s431_s16 + $0xa8] sm:$0xff]  ;;  %v482_v39 = vld [vmem:[%s431_s16 + $0xb0] sm:$0xff]  ;;  %v485_v40 = vld [vmem:[%s431_s16 + $0xb8] sm:$0xff]  ;;  %v219_v56 = vadd.f32 %v436_v1, %v185_v24  ;;  %v189_v57 = vmul.f32 %v423_v0, %v155_v25  ;;  %v248_v58 = vmax.f32 %v216_v29, 0.0  ;;  %v220_v59 = vadd.f32 %v436_v1, %v186_v30 }
  0x16   : > { %v488_v41 = vld [vmem:[%s431_s16 + $0xc0] sm:$0xff]  ;;  %v491_v42 = vld [vmem:[%s431_s16 + $0xc8] sm:$0xff]  ;;  %v496_v46 = vld [vmem:[%s431_s16 + $0xd0] sm:$0xff]  ;;  %v190_v60 = vmul.f32 %v423_v0, %v156_v26  ;;  %v249_v61 = vmax.f32 %v217_v44, 0.0  ;;  %v221_v62 = vadd.f32 %v436_v1, %v187_v45  ;;  %v191_v63 = vmul.f32 %v423_v0, %v157_v27 }
  0x17   : > { %v499_v47 = vld [vmem:[%s431_s16 + $0xd8] sm:$0xff]  ;;  %v502_v48 = vld [vmem:[%s431_s16 + $0xe0] sm:$0xff]  ;;  %v507_v52 = vld [vmem:[%s431_s16 + $0xe8] sm:$0xff]  ;;  %v250_v2 = vmax.f32 %v218_v50, 0.0  ;;  %v222_v3 = vadd.f32 %v436_v1, %v188_v51  ;;  %v192_v4 = vmul.f32 %v423_v0, %v158_v31  ;;  %v251_v5 = vmax.f32 %v219_v56, 0.0 }
  0x18   : > { %v510_v53 = vld [vmem:[%s431_s16 + $0xf0] sm:$0xff]  ;;  %v513_v54 = vld [vmem:[%s431_s16 + $0xf8] sm:$0xff]  ;;  %v223_v6 = vadd.f32 %v436_v1, %v189_v57  ;;  %v193_v7 = vmul.f32 %v423_v0, %v159_v32  ;;  %v252_v8 = vmax.f32 %v220_v59, 0.0  ;;  %v224_v9 = vadd.f32 %v436_v1, %v190_v60 }
  0x19   : > { %277 = vst.msk [vmem:[%s471_s21] sm:$0xff] %vm276_vm0, %v244_v28  ;;  %v194_v10 = vmul.f32 %v423_v0, %v160_v33  ;;  %v253_v11 = vmax.f32 %v221_v62, 0.0  ;;  %v225_v12 = vadd.f32 %v436_v1, %v191_v63  ;;  %v195_v13 = vmul.f32 %v423_v0, %v161_v34 }
  0x1a   : > { %278 = vst.msk [vmem:[%s471_s21 + $0x8] sm:$0xff] %vm276_vm0, %v245_v43  ;;  %v254_v14 = vmax.f32 %v222_v3, 0.0  ;;  %v226_v15 = vadd.f32 %v436_v1, %v192_v4  ;;  %v196_v16 = vmul.f32 %v423_v0, %v162_v35  ;;  %v255_v17 = vmax.f32 %v223_v6, 0.0 }
  0x1b   : > { %279 = vst.msk [vmem:[%s471_s21 + $0x10] sm:$0xff] %vm276_vm0, %v246_v49  ;;  %v227_v18 = vadd.f32 %v436_v1, %v193_v7  ;;  %v197_v19 = vmul.f32 %v423_v0, %v163_v36  ;;  %v256_v20 = vmax.f32 %v224_v9, 0.0  ;;  %v228_v21 = vadd.f32 %v436_v1, %v194_v10 }
  0x1c   : > { %280 = vst.msk [vmem:[%s471_s21 + $0x18] sm:$0xff] %vm276_vm0, %v247_v55  ;;  %v198_v22 = vmul.f32 %v423_v0, %v164_v37  ;;  %v257_v23 = vmax.f32 %v225_v12, 0.0  ;;  %v229_v24 = vadd.f32 %v436_v1, %v195_v13  ;;  %v199_v25 = vmul.f32 %v423_v0, %v165_v38 }
  0x1d   : > { %281 = vst.msk [vmem:[%s471_s21 + $0x20] sm:$0xff] %vm276_vm0, %v248_v58  ;;  %v258_v26 = vmax.f32 %v226_v15, 0.0  ;;  %v230_v27 = vadd.f32 %v436_v1, %v196_v16  ;;  %v200_v28 = vmul.f32 %v423_v0, %v482_v39  ;;  %v259_v29 = vmax.f32 %v227_v18, 0.0 }
  0x1e   : > { %282 = vst.msk [vmem:[%s471_s21 + $0x28] sm:$0xff] %vm276_vm0, %v249_v61  ;;  %v231_v30 = vadd.f32 %v436_v1, %v197_v19  ;;  %v201_v31 = vmul.f32 %v423_v0, %v485_v40  ;;  %v260_v32 = vmax.f32 %v228_v21, 0.0  ;;  %v232_v33 = vadd.f32 %v436_v1, %v198_v22 }
  0x1f   : > { %283 = vst.msk [vmem:[%s471_s21 + $0x30] sm:$0xff] %vm276_vm0, %v250_v2  ;;  %v202_v34 = vmul.f32 %v423_v0, %v488_v41  ;;  %v261_v35 = vmax.f32 %v229_v24, 0.0  ;;  %v233_v36 = vadd.f32 %v436_v1, %v199_v25  ;;  %v203_v37 = vmul.f32 %v423_v0, %v491_v42 }
  0x20   : > { %284 = vst.msk [vmem:[%s471_s21 + $0x38] sm:$0xff] %vm276_vm0, %v251_v5  ;;  %v262_v38 = vmax.f32 %v230_v27, 0.0  ;;  %v234_v39 = vadd.f32 %v436_v1, %v200_v28  ;;  %v204_v40 = vmul.f32 %v423_v0, %v496_v46  ;;  %v263_v41 = vmax.f32 %v231_v30, 0.0 }
  0x21   : > { %285 = vst.msk [vmem:[%s471_s21 + $0x40] sm:$0xff] %vm276_vm0, %v252_v8  ;;  %v235_v43 = vadd.f32 %v436_v1, %v201_v31  ;;  %v205_v44 = vmul.f32 %v423_v0, %v499_v47  ;;  %v264_v42 = vmax.f32 %v232_v33, 0.0  ;;  %v236_v45 = vadd.f32 %v436_v1, %v202_v34 }
  0x22   : > { %286 = vst.msk [vmem:[%s471_s21 + $0x48] sm:$0xff] %vm276_vm0, %v253_v11  ;;  %v206_v49 = vmul.f32 %v423_v0, %v502_v48  ;;  %v265_v46 = vmax.f32 %v233_v36, 0.0  ;;  %v237_v50 = vadd.f32 %v436_v1, %v203_v37  ;;  %v207_v51 = vmul.f32 %v423_v0, %v507_v52 }
  0x23   : > { %287 = vst.msk [vmem:[%s471_s21 + $0x50] sm:$0xff] %vm276_vm0, %v254_v14  ;;  %v266_v47 = vmax.f32 %v234_v39, 0.0  ;;  %v238_v55 = vadd.f32 %v436_v1, %v204_v40  ;;  %v208_v56 = vmul.f32 %v423_v0, %v510_v53  ;;  %v267_v48 = vmax.f32 %v235_v43, 0.0 }
  0x24   : > { %288 = vst.msk [vmem:[%s471_s21 + $0x58] sm:$0xff] %vm276_vm0, %v255_v17  ;;  %v239_v57 = vadd.f32 %v436_v1, %v205_v44  ;;  %v209_v58 = vmul.f32 %v423_v0, %v513_v54  ;;  %v268_v52 = vmax.f32 %v236_v45, 0.0  ;;  %v240_v59 = vadd.f32 %v436_v1, %v206_v49 }
  0x25   : > { %289 = vst.msk [vmem:[%s471_s21 + $0x60] sm:$0xff] %vm276_vm0, %v256_v20  ;;  %v269_v53 = vmax.f32 %v237_v50, 0.0  ;;  %v241_v60 = vadd.f32 %v436_v1, %v207_v51  ;;  %v270_v61 = vmax.f32 %v238_v55, 0.0  ;;  %v242_v0 = vadd.f32 %v436_v1, %v208_v56 }
  0x26   : > { %290 = vst.msk [vmem:[%s471_s21 + $0x68] sm:$0xff] %vm276_vm0, %v257_v23  ;;  %v271_v54 = vmax.f32 %v239_v57, 0.0  ;;  %v243_v62 = vadd.f32 %v436_v1, %v209_v58  ;;  %v272_v63 = vmax.f32 %v240_v59, 0.0 }
  0x27   : > { %291 = vst.msk [vmem:[%s471_s21 + $0x70] sm:$0xff] %vm276_vm0, %v258_v26  ;;  %v273_v2 = vmax.f32 %v241_v60, 0.0  ;;  %v274_v3 = vmax.f32 %v242_v0, 0.0 }
  0x28   : > { %292 = vst.msk [vmem:[%s471_s21 + $0x78] sm:$0xff] %vm276_vm0, %v259_v29  ;;  %v275_v4 = vmax.f32 %v243_v62, 0.0 }
  0x29   : > { %293 = vst.msk [vmem:[%s471_s21 + $0x80] sm:$0xff] %vm276_vm0, %v260_v32 }
  0x2a   : > { %294 = vst.msk [vmem:[%s471_s21 + $0x88] sm:$0xff] %vm276_vm0, %v261_v35 }
  0x2b   : > { %295 = vst.msk [vmem:[%s471_s21 + $0x90] sm:$0xff] %vm276_vm0, %v262_v38 }
  0x2c   : > { %296 = vst.msk [vmem:[%s471_s21 + $0x98] sm:$0xff] %vm276_vm0, %v263_v41 }
  0x2d   : > { %297 = vst.msk [vmem:[%s471_s21 + $0xa0] sm:$0xff] %vm276_vm0, %v264_v42 }
  0x2e   : > { %298 = vst.msk [vmem:[%s471_s21 + $0xa8] sm:$0xff] %vm276_vm0, %v265_v46 }
  0x2f   : > { %299 = vst.msk [vmem:[%s471_s21 + $0xb0] sm:$0xff] %vm276_vm0, %v266_v47 }
  0x30   : > { %300 = vst.msk [vmem:[%s471_s21 + $0xb8] sm:$0xff] %vm276_vm0, %v267_v48 }
  0x31   : > { %301 = vst.msk [vmem:[%s471_s21 + $0xc0] sm:$0xff] %vm276_vm0, %v268_v52 }
  0x32   : > { %302 = vst.msk [vmem:[%s471_s21 + $0xc8] sm:$0xff] %vm276_vm0, %v269_v53 }
  0x33   : > { %303 = vst.msk [vmem:[%s471_s21 + $0xd0] sm:$0xff] %vm276_vm0, %v270_v61 }
  0x34   : > { %304 = vst.msk [vmem:[%s471_s21 + $0xd8] sm:$0xff] %vm276_vm0, %v271_v54 }
  0x35   : > { %305 = vst.msk [vmem:[%s471_s21 + $0xe0] sm:$0xff] %vm276_vm0, %v272_v63 }
  0x36   : > { %306 = vst.msk [vmem:[%s471_s21 + $0xe8] sm:$0xff] %vm276_vm0, %v273_v2 }
  0x37   : > { %307 = vst.msk [vmem:[%s471_s21 + $0xf0] sm:$0xff] %vm276_vm0, %v274_v3 }
  0x38   : > { %308 = vst.msk [vmem:[%s471_s21 + $0xf8] sm:$0xff] %vm276_vm0, %v275_v4 }
  0x39 PF: > { %s12_s9 = sadd.s32 1, %s393_s9  }
  0x3a   : > { %p9_p4 = scmp.ge.s32.totalorder %s12_s9, 4  }
  0x3c   :  { %11 = sbr.rel (!%p9_p4) target bundleno = 1 (0x1), region = 58 }

// kernel: conv_block_forward.2
= control target key start
LH: loop header
LB: loop body
LE: loop exit
PB: predicated region body
PF: predicated region fallthrough
CT: control target
= control target key end

     0   :  { %s1273_s12 = smov 0   ;;  %s1779_s0 = inlined_call_operand.vmem [shape: f32[2,288,16], index: 0, kind: input, shape index: {}]   ;;  %s1780_s1 = inlined_call_operand.vmem [shape: f32[3,16,128], index: 1, kind: input, shape index: {}]   ;;  %s1781_s2 = inlined_call_operand.vmem [shape: f32[2,256,8], index: 2, kind: output, shape index: {0}]   ;;  %s1782_s3 = inlined_call_operand.vmem [shape: f32[2,2,8], index: 3, kind: output, shape index: {1}]  }
   0x1 LB: > { %s1118_s13 = sadd.s32 4294967295, %s1251_s12   ;;  %p1122_p0 = scmp.ge.s32.totalorder %s1251_s12, 1  ;;  %s1251_s12 = sphi %s1273_s12, %s14_s12  }
   0x2   : > { %p140_p1 = scmp.lt.s32.totalorder %s1251_s12, 3 }
   0x4   : > { %p141_p2 = pnand %p1122_p0, %p140_p1 }
   0x5   : > { %p168_p3 = scmp.lt.s32.totalorder (!%p141_p2), %s1118_s13, 1 }
   0x6   : > { %144 = sbr.rel (%p141_p2) target bundleno = 368 (0x170), region = 28 }
   0xb   : > { %v1128_v0 = vld [vmem:[%s1780_s1 + $0x18] sm:$0xff]  ;;  %v1194_v1 = vld [vmem:[%s1780_s1 + $0x28] sm:$0xff]  ;;  %v1127_v2 = vld [vmem:[%s1780_s1 + $0x10] sm:$0xff]  ;;  %s1784_s13 = smov (!%p168_p3, %s1118_s13), 1  ;;  %vm221_vm0 = vcmask 130048   ;;  %vm826_vm1 = vcmask 64512  }
   0xc   : > { %1230 = vmatpush.msra.mxu3 %v1128_v0  ;;  %695 = vmatpush.msra.mxu2 %v1194_v1  ;;  %v1193_v3 = vld [vmem:[%s1780_s1 + $0x20] sm:$0xff]  ;;  %v215_v4 = vld [vmem:[%s1780_s1 + $0x8] sm:$0xff]  ;;  %s1236_s26 = smul.u32 288, %s1784_s13  ;;  %s1229_s30 = sshll.u32 %s1784_s13, 8  ;;  %vm928_vm2 = vcmask 57344  }
   0xd   : > { %v214_v5 = vld [vmem:[%s1780_s1] sm:$0xff]  ;;  %332 = vmatpush.msra.mxu0 %v1128_v0  ;;  %451 = vmatpush.msra.mxu1 %v215_v4  ;;  %s1455_s6 = scalar_lea.vmem %s1781_s2, %s1229_s30  ;;  %s1126_s7 = sshll.u32 %s1784_s13, 1 }
   0xe   : > { %1231 = vmatpush.msra.mxu3 %v1127_v2  ;;  %696 = vmatpush.msra.mxu2 %v1193_v3  ;;  %s1305_s29 = scalar_lea.vmem %s1779_s0, %s1236_s26  ;;  %s181_s10 = scalar_lea.vmem %s1782_s3, %s1126_s7 }
   0xf   : > { %333 = vmatpush.msra.mxu0 %v1127_v2  ;;  %452 = vmatpush.msra.mxu1 %v214_v5  ;;  %v1308_v6 = vld [vmem:[%s1305_s29 + $0xd0] sm:$0xff]  ;;  %v550_v7 = vld [vmem:[%s1305_s29 + $0x20] sm:$0xff]  ;;  %v1319_v10 = vld [vmem:[%s1305_s29 + $0xd8] sm:$0xff] }
  0x10   : > { %1232 = vmatpush.msrb.mxu3 %v215_v4  ;;  %v184_v8 = vld [vmem:[%s1305_s29 + $0x10] sm:$0xff]  ;;  %1195 = vmatmul.msk.f32.vlgmr.msra.gmra.mxu2 %vm221_vm0, %v550_v7  ;;  %v182_v9 = vld [vmem:[%s1305_s29] sm:$0xff]  ;;  %v551_v11 = vld [vmem:[%s1305_s29 + $0x28] sm:$0xff] }
  0x11   : > { %1153 = vmatmul.msk.f32.vlgmr.msra.gmra.mxu3 %vm221_vm0, %v1308_v6  ;;  %1129 = vmatmul.msk.f32.vlgmr.msra.gmra.mxu0 %vm221_vm0, %v184_v8  ;;  %v185_v12 = vld [vmem:[%s1305_s29 + $0x18] sm:$0xff]  ;;  %v183_v13 = vld [vmem:[%s1305_s29 + $0x8] sm:$0xff]  ;;  %v1330_v14 = vld [vmem:[%s1305_s29 + $0xe0] sm:$0xff] }
  0x12   : > { %1233 = vmatpush.msrb.mxu3 %v214_v5  ;;  %1161 = vmatmul.msk.f32.vlgmr.msra.gmra.mxu1 %vm221_vm0, %v182_v9  ;;  %v552_v15 = vld [vmem:[%s1305_s29 + $0x30] sm:$0xff]  ;;  %v1339_v16 = vld [vmem:[%s1305_s29 + $0xe8] sm:$0xff]  ;;  %v553_v17 = vld [vmem:[%s1305_s29 + $0x38] sm:$0xff] }
  0x13   : > { %v1348_v18 = vld [vmem:[%s1305_s29 + $0xf0] sm:$0xff]  ;;  %v554_v19 = vld [vmem:[%s1305_s29 + $0x40] sm:$0xff]  ;;  %v1357_v20 = vld [vmem:[%s1305_s29 + $0xf8] sm:$0xff] }
  0x14   : > { %1234 = vmatpush.msra.mxu3 %v1194_v1  ;;  %v555_v21 = vld [vmem:[%s1305_s29 + $0x48] sm:$0xff]  ;;  %v1366_v22 = vld [vmem:[%s1305_s29 + $0x100] sm:$0xff]  ;;  %v556_v23 = vld [vmem:[%s1305_s29 + $0x50] sm:$0xff] }
  0x15   : > { %v1375_v24 = vld [vmem:[%s1305_s29 + $0x108] sm:$0xff]  ;;  %v557_v25 = vld [vmem:[%s1305_s29 + $0x58] sm:$0xff]  ;;  %v1384_v26 = vld [vmem:[%s1305_s29 + $0xc0] sm:$0xff] }
  0x16   : > { %1235 = vmatpush.msra.mxu3 %v1193_v3  ;;  %v558_v27 = vld [vmem:[%s1305_s29 + $0x60] sm:$0xff]  ;;  %v1393_v28 = vld [vmem:[%s1305_s29 + $0xc8] sm:$0xff]  ;;  %v560_v30 = vld [vmem:[%s1305_s29 + $0x70] sm:$0xff] }
  0x17   : > { %v559_v29 = vld [vmem:[%s1305_s29 + $0x68] sm:$0xff]  ;;  %v561_v31 = vld [vmem:[%s1305_s29 + $0x78] sm:$0xff]  ;;  %v562_v32 = vld [vmem:[%s1305_s29 + $0x80] sm:$0xff] }
  0x18   : > { %1196 = vmatmul.msk.f32.gmra.mxu2 %vm221_vm0, %v551_v11  ;;  %v563_v33 = vld [vmem:[%s1305_s29 + $0x88] sm:$0xff]  ;;  %v564_v34 = vld [vmem:[%s1305_s29 + $0x90] sm:$0xff]  ;;  %v1432_v35 = vld [vmem:[%s1305_s29 + $0x98] sm:$0xff] }
  0x19   : > { %1154 = vmatmul.msk.f32.gmra.mxu3 %vm221_vm0, %v1319_v10  ;;  %1130 = vmatmul.msk.f32.gmra.mxu0 %vm221_vm0, %v185_v12  ;;  %v1441_v36 = vld [vmem:[%s1305_s29 + $0xa0] sm:$0xff]  ;;  %v1458_v43 = vld [vmem:[%s1305_s29 + $0xa8] sm:$0xff]  ;;  %v1472_v51 = vld [vmem:[%s1305_s29 + $0xb0] sm:$0xff] }
  0x1a   : > { %1162 = vmatmul.msk.f32.gmra.mxu1 %vm221_vm0, %v183_v13  ;;  %v1490_v1 = vld [vmem:[%s1305_s29 + $0xb8] sm:$0xff] }
  0x20   : > { %1197 = vmatmul.msk.f32.gmra.mxu2 %vm221_vm0, %v552_v15 }
  0x21   : > { %1155 = vmatmul.msk.f32.gmra.mxu3 %vm221_vm0, %v1330_v14  ;;  %1131 = vmatmul.msk.f32.gmra.mxu0 %vm221_vm0, %v550_v7 }
  0x22   : > { %1163 = vmatmul.msk.f32.gmra.mxu1 %vm221_vm0, %v184_v8 }
  0x28   : > { %1198 = vmatmul.msk.f32.gmra.mxu2 %vm221_vm0, %v553_v17 }
  0x29   : > { %1156 = vmatmul.msk.f32.gmra.mxu3 %vm221_vm0, %v1339_v16  ;;  %1132 = vmatmul.msk.f32.gmra.mxu0 %vm221_vm0, %v551_v11 }
  0x2a   : > { %1164 = vmatmul.msk.f32.gmra.mxu1 %vm221_vm0, %v185_v12 }
  0x30   : > { %1199 = vmatmul.msk.f32.gmra.mxu2 %vm221_vm0, %v554_v19 }
  0x31   : > { %1157 = vmatmul.msk.f32.gmra.mxu3 %vm221_vm0, %v1348_v18  ;;  %1133 = vmatmul.msk.f32.gmra.mxu0 %vm221_vm0, %v552_v15 }
  0x32   : > { %1165 = vmatmul.msk.f32.gmra.mxu1 %vm221_vm0, %v550_v7 }
  0x38   : > { %1200 = vmatmul.msk.f32.gmra.mxu2 %vm221_vm0, %v555_v21 }
  0x39   : > { %1158 = vmatmul.msk.f32.gmra.mxu3 %vm221_vm0, %v1357_v20  ;;  %1134 = vmatmul.msk.f32.gmra.mxu0 %vm221_vm0, %v553_v17 }
  0x3a   : > { %1166 = vmatmul.msk.f32.gmra.mxu1 %vm221_vm0, %v551_v11 }
  0x40   : > { %1201 = vmatmul.msk.f32.gmra.mxu2 %vm221_vm0, %v556_v23 }
  0x41   : > { %1159 = vmatmul.msk.f32.gmra.mxu3 %vm221_vm0, %v1366_v22  ;;  %1135 = vmatmul.msk.f32.gmra.mxu0 %vm221_vm0, %v554_v19 }
  0x42   : > { %1167 = vmatmul.msk.f32.gmra.mxu1 %vm221_vm0, %v552_v15 }
  0x48   : > { %1202 = vmatmul.msk.f32.gmra.mxu2 %vm221_vm0, %v557_v25 }
  0x49   : > { %1160 = vmatmul.msk.f32.gmra.mxu3 %vm221_vm0, %v1375_v24  ;;  %1136 = vmatmul.msk.f32.gmra.mxu0 %vm221_vm0, %v555_v21 }
  0x4a   : > { %1168 = vmatmul.msk.f32.gmra.mxu1 %vm221_vm0, %v553_v17 }
  0x50   : > { %1203 = vmatmul.msk.f32.gmra.mxu2 %vm221_vm0, %v558_v27 }
  0x51   : > { %1185 = vmatmul.msk.f32.vlgmr.msrb.gmra.mxu3 %vm221_vm0, %v1384_v26  ;;  %1137 = vmatmul.msk.f32.gmra.mxu0 %vm221_vm0, %v556_v23 }
  0x52   : > { %1169 = vmatmul.msk.f32.gmra.mxu1 %vm221_vm0, %v554_v19 }
  0x58   : > { %1204 = vmatmul.msk.f32.gmra.mxu2 %vm221_vm0, %v559_v29 }
  0x59   : > { %1186 = vmatmul.msk.f32.gmra.mxu3 %vm221_vm0, %v1393_v28  ;;  %1138 = vmatmul.msk.f32.gmra.mxu0 %vm221_vm0, %v557_v25 }
  0x5a   : > { %1170 = vmatmul.msk.f32.gmra.mxu1 %vm221_vm0, %v555_v21 }
  0x60   : > { %1205 = vmatmul.msk.f32.gmra.mxu2 %vm221_vm0, %v560_v30 }
  0x61   : > { %1187 = vmatmul.msk.f32.gmra.mxu3 %vm221_vm0, %v1308_v6  ;;  %1139 = vmatmul.msk.f32.gmra.mxu0 %vm221_vm0, %v558_v27 }
  0x62   : > { %1171 = vmatmul.msk.f32.gmra.mxu1 %vm221_vm0, %v556_v23 }
  0x68   : > { %1206 = vmatmul.msk.f32.gmra.mxu2 %vm221_vm0, %v561_v31 }
  0x69   : > { %1188 = vmatmul.msk.f32.gmra.mxu3 %vm221_vm0, %v1319_v10  ;;  %1140 = vmatmul.msk.f32.gmra.mxu0 %vm221_vm0, %v559_v29 }
  0x6a   : > { %1172 = vmatmul.msk.f32.gmra.mxu1 %vm221_vm0, %v557_v25 }
  0x70   : > { %1207 = vmatmul.msk.f32.gmra.mxu2 %vm221_vm0, %v562_v32 }
  0x71   : > { %1189 = vmatmul.msk.f32.gmra.mxu3 %vm221_vm0, %v1330_v14  ;;  %1141 = vmatmul.msk.f32.gmra.mxu0 %vm221_vm0, %v560_v30 }
  0x72   : > { %1173 = vmatmul.msk.f32.gmra.mxu1 %vm221_vm0, %v558_v27 }
  0x78   : > { %1208 = vmatmul.msk.f32.gmra.mxu2 %vm221_vm0, %v563_v33 }
  0x79   : > { %1190 = vmatmul.msk.f32.gmra.mxu3 %vm221_vm0, %v1339_v16  ;;  %1142 = vmatmul.msk.f32.gmra.mxu0 %vm221_vm0, %v561_v31 }
  0x7a   : > { %1174 = vmatmul.msk.f32.gmra.mxu1 %vm221_vm0, %v559_v29 }
  0x80   : > { %1209 = vmatmul.msk.f32.gmra.mxu2 %vm221_vm0, %v564_v34 }
  0x81   : > { %1191 = vmatmul.msk.f32.gmra.mxu3 %vm221_vm0, %v1348_v18  ;;  %1143 = vmatmul.msk.f32.gmra.mxu0 %vm221_vm0, %v562_v32 }
  0x82   : > { %1175 = vmatmul.msk.f32.gmra.mxu1 %vm221_vm0, %v560_v30 }
  0x88   : > { %1210 = vmatmul.msk.f32.gmra.mxu2 %vm221_vm0, %v1432_v35 }
  0x89   : > { %1192 = vmatmul.msk.f32.gmra.mxu3 %vm221_vm0, %v1357_v20  ;;  %1144 = vmatmul.msk.f32.gmra.mxu0 %vm221_vm0, %v563_v33 }
  0x8a   : > { %1176 = vmatmul.msk.f32.gmra.mxu1 %vm221_vm0, %v561_v31 }
  0x8e   : > { %v335_v37 = vpop.f32.mrf.mxu0 }
  0x8f   : > { %v454_v38 = vpop.f32.mrf.mxu1 }
  0x90   : > { %1211 = vmatmul.msk.f32.gmra.mxu2 %vm221_vm0, %v1441_v36  ;;  %v455_v39 = vadd.f32 %v454_v38, %v335_v37 }
  0x91   : > { %1219 = vmatmul.msk.f32.vlgmr.msra.gmra.mxu3 %vm221_vm0, %v1330_v14  ;;  %1145 = vmatmul.msk.f32.gmra.mxu0 %vm221_vm0, %v564_v34 }
  0x92   : > { %1177 = vmatmul.msk.f32.gmra.mxu1 %vm221_vm0, %v562_v32 }
  0x93   : > { %v698_v41 = vpop.f32.mrf.mxu2 }
  0x94   : > { %v1450_v40 = vpop.f32.mrf.mxu3  ;;  %v794_v42 = vadd.f32 %v698_v41, %v455_v39  ;;  %v580_v41 = vld [vmem:[%s1305_s29 + $0x110] sm:$0xff] }
  0x96   : > { %827 = vst.msk [vmem:[%s1455_s6] sm:$0xff] %vm826_vm1, %v794_v42  ;;  %v338_v44 = vpop.f32.mrf.mxu0  ;;  %v930_v49 = vmul.f32 %v794_v42, %v794_v42  ;;  %v859_v52 = vsel %vm826_vm1, %v794_v42, 0.0 }
  0x97   : > { %v457_v45 = vpop.f32.mrf.mxu1 }
  0x98   : > { %1212 = vmatmul.msk.f32.gmra.mxu2 %vm221_vm0, %v1458_v43  ;;  %v458_v46 = vadd.f32 %v457_v45, %v338_v44  ;;  %v962_v58 = vsel %vm826_vm1, %v930_v49, 0.0 }
  0x99   : > { %1220 = vmatmul.msk.f32.gmra.mxu3 %vm221_vm0, %v1339_v16  ;;  %1146 = vmatmul.msk.f32.gmra.mxu0 %vm221_vm0, %v1432_v35 }
  0x9a   : > { %1178 = vmatmul.msk.f32.gmra.mxu1 %vm221_vm0, %v563_v33 }
  0x9b   : > { %v701_v48 = vpop.f32.mrf.mxu2 }
  0x9c   : > { %v1469_v47 = vpop.f32.mrf.mxu3  ;;  %v795_v50 = vadd.f32 %v701_v48, %v458_v46 }
  0x9e   : > { %828 = vst.msk [vmem:[%s1455_s6 + $0x8] sm:$0xff] %vm826_vm1, %v795_v50  ;;  %v860_v53 = vsel %vm826_vm1, %v795_v50, 0.0  ;;  %v931_v54 = vmul.f32 %v795_v50, %v795_v50  ;;  %v341_v55 = vpop.f32.mrf.mxu0 }
  0x9f   : > { %v460_v56 = vpop.f32.mrf.mxu1  ;;  %v861_v57 = vadd.f32 %v860_v53, %v859_v52 }
  0xa0   : > { %v963_v59 = vsel %vm826_vm1, %v931_v54, 0.0  ;;  %1213 = vmatmul.msk.f32.gmra.mxu2 %vm221_vm0, %v1472_v51  ;;  %v461_v60 = vadd.f32 %v460_v56, %v341_v55  ;;  %v581_v54 = vld [vmem:[%s1305_s29 + $0x118] sm:$0xff] }
  0xa1   : > { %1221 = vmatmul.msk.f32.gmra.mxu3 %vm221_vm0, %v1348_v18  ;;  %v964_v61 = vadd.f32 %v963_v59, %v962_v58  ;;  %1147 = vmatmul.msk.f32.gmra.mxu0 %vm221_vm0, %v1441_v36 }
  0xa2   : > { %1179 = vmatmul.msk.f32.gmra.mxu1 %vm221_vm0, %v564_v34 }
  0xa3   : > { %v704_v63 = vpop.f32.mrf.mxu2 }
  0xa4   : > { %v1487_v62 = vpop.f32.mrf.mxu3  ;;  %v796_v0 = vadd.f32 %v704_v63, %v461_v60 }
  0xa6   : > { %829 = vst.msk [vmem:[%s1455_s6 + $0x10] sm:$0xff] %vm826_vm1, %v796_v0  ;;  %v862_v2 = vsel %vm826_vm1, %v796_v0, 0.0  ;;  %v932_v3 = vmul.f32 %v796_v0, %v796_v0  ;;  %v344_v4 = vpop.f32.mrf.mxu0 }
  0xa7   : > { %v463_v5 = vpop.f32.mrf.mxu1  ;;  %v863_v7 = vadd.f32 %v862_v2, %v861_v57 }
  0xa8   : > { %v965_v8 = vsel %vm826_vm1, %v932_v3, 0.0  ;;  %1214 = vmatmul.msk.f32.gmra.mxu2 %vm221_vm0, %v1490_v1  ;;  %v464_v9 = vadd.f32 %v463_v5, %v344_v4 }
  0xa9   : > { %1222 = vmatmul.msk.f32.gmra.mxu3 %vm221_vm0, %v1357_v20  ;;  %v966_v11 = vadd.f32 %v965_v8, %v964_v61  ;;  %1148 = vmatmul.msk.f32.gmra.mxu0 %vm221_vm0, %v1458_v43 }
  0xaa   : > { %1180 = vmatmul.msk.f32.gmra.mxu1 %vm221_vm0, %v1432_v35 }
  0xab   : > { %v707_v13 = vpop.f32.mrf.mxu2 }
  0xac   : > { %v1504_v12 = vpop.f32.mrf.mxu3  ;;  %v797_v14 = vadd.f32 %v707_v13, %v464_v9 }
  0xae   : > { %830 = vst.msk [vmem:[%s1455_s6 + $0x18] sm:$0xff] %vm826_vm1, %v797_v14  ;;  %v864_v15 = vsel %vm826_vm1, %v797_v14, 0.0  ;;  %v933_v16 = vmul.f32 %v797_v14, %v797_v14  ;;  %v347_v17 = vpop.f32.mrf.mxu0 }
  0xaf   : > { %v466_v18 = vpop.f32.mrf.mxu1  ;;  %v865_v19 = vadd.f32 %v864_v15, %v863_v7 }
  0xb0   : > { %v967_v20 = vsel %vm826_vm1, %v933_v16, 0.0  ;;  %1215 = vmatmul.msk.f32.gmra.mxu2 %vm221_vm0, %v1384_v26  ;;  %v467_v21 = vadd.f32 %v466_v18, %v347_v17 }
  0xb1   : > { %1223 = vmatmul.msk.f32.gmra.mxu3 %vm221_vm0, %v1366_v22  ;;  %v968_v23 = vadd.f32 %v967_v20, %v966_v11  ;;  %1149 = vmatmul.msk.f32.gmra.mxu0 %vm221_vm0, %v1472_v51 }
  0xb2   : > { %1181 = vmatmul.msk.f32.gmra.mxu1 %vm221_vm0, %v1441_v36 }
  0xb3   : > { %v710_v27 = vpop.f32.mrf.mxu2 }
  0xb4   : > { %v1518_v25 = vpop.f32.mrf.mxu3  ;;  %v798_v29 = vadd.f32 %v710_v27, %v467_v21 }
  0xb6   : > { %831 = vst.msk [vmem:[%s1455_s6 + $0x20] sm:$0xff] %vm826_vm1, %v798_v29  ;;  %v866_v30 = vsel %vm826_vm1, %v798_v29, 0.0  ;;  %v934_v31 = vmul.f32 %v798_v29, %v798_v29  ;;  %v350_v22 = vpop.f32.mrf.mxu0 }
  0xb7   : > { %v469_v32 = vpop.f32.mrf.mxu1  ;;  %v867_v33 = vadd.f32 %v866_v30, %v865_v19 }
  0xb8   : > { %v969_v34 = vsel %vm826_vm1, %v934_v31, 0.0  ;;  %1216 = vmatmul.msk.f32.gmra.mxu2 %vm221_vm0, %v1393_v28  ;;  %v470_v35 = vadd.f32 %v469_v32, %v350_v22 }
  0xb9   : > { %1224 = vmatmul.msk.f32.gmra.mxu3 %vm221_vm0, %v1375_v24  ;;  %v970_v36 = vadd.f32 %v969_v34, %v968_v23  ;;  %1150 = vmatmul.msk.f32.gmra.mxu0 %vm221_vm0, %v1490_v1 }
  0xba   : > { %1182 = vmatmul.msk.f32.gmra.mxu1 %vm221_vm0, %v1458_v43 }
  0xbb   : > { %v713_v38 = vpop.f32.mrf.mxu2 }
  0xbc   : > { %v1532_v37 = vpop.f32.mrf.mxu3  ;;  %v799_v39 = vadd.f32 %v713_v38, %v470_v35 }
  0xbe   : > { %832 = vst.msk [vmem:[%s1455_s6 + $0x28] sm:$0xff] %vm826_vm1, %v799_v39  ;;  %v868_v42 = vsel %vm826_vm1, %v799_v39, 0.0  ;;  %v935_v24 = vmul.f32 %v799_v39, %v799_v39  ;;  %v353_v44 = vpop.f32.mrf.mxu0 }
  0xbf   : > { %v472_v45 = vpop.f32.mrf.mxu1  ;;  %v869_v46 = vadd.f32 %v868_v42, %v867_v33 }
  0xc0   : > { %v971_v48 = vsel %vm826_vm1, %v935_v24, 0.0  ;;  %1217 = vmatmul.msk.f32.gmra.mxu2 %vm221_vm0, %v1308_v6  ;;  %v473_v43 = vadd.f32 %v472_v45, %v353_v44 }
  0xc1   : > { %1225 = vmatmul.msk.f32.gmra.mxu3 %vm221_vm0, %v580_v41  ;;  %v972_v49 = vadd.f32 %v971_v48, %v970_v36  ;;  %1151 = vmatmul.msk.f32.gmra.mxu0 %vm221_vm0, %v1384_v26 }
  0xc2   : > { %1183 = vmatmul.msk.f32.gmra.mxu1 %vm221_vm0, %v1472_v51 }
  0xc3   : > { %v716_v52 = vpop.f32.mrf.mxu2 }
  0xc4   : > { %v1546_v50 = vpop.f32.mrf.mxu3  ;;  %v800_v53 = vadd.f32 %v716_v52, %v473_v43 }
  0xc6   : > { %833 = vst.msk [vmem:[%s1455_s6 + $0x30] sm:$0xff] %vm826_vm1, %v800_v53  ;;  %v870_v6 = vsel %vm826_vm1, %v800_v53, 0.0  ;;  %v936_v55 = vmul.f32 %v800_v53, %v800_v53  ;;  %v356_v56 = vpop.f32.mrf.mxu0 }
  0xc7   : > { %v475_v57 = vpop.f32.mrf.mxu1  ;;  %v871_v58 = vadd.f32 %v870_v6, %v869_v46 }
  0xc8   : > { %v973_v59 = vsel %vm826_vm1, %v936_v55, 0.0  ;;  %1218 = vmatmul.msk.f32.gmra.mxu2 %vm221_vm0, %v1319_v10  ;;  %v476_v26 = vadd.f32 %v475_v57, %v356_v56 }
  0xc9   : > { %1226 = vmatmul.msk.f32.gmra.mxu3 %vm221_vm0, %v581_v54  ;;  %v974_v51 = vadd.f32 %v973_v59, %v972_v49  ;;  %1152 = vmatmul.msk.f32.gmra.mxu0 %vm221_vm0, %v1393_v28 }
  0xca   : > { %1184 = vmatmul.msk.f32.gmra.mxu1 %vm221_vm0, %v1490_v1 }
  0xcb   : > { %v719_v61 = vpop.f32.mrf.mxu2 }
  0xcc   : > { %v1560_v60 = vpop.f32.mrf.mxu3  ;;  %v801_v63 = vadd.f32 %v719_v61, %v476_v26 }
  0xce   : > { %834 = vst.msk [vmem:[%s1455_s6 + $0x38] sm:$0xff] %vm826_vm1, %v801_v63  ;;  %v872_v0 = vsel %vm826_vm1, %v801_v63, 0.0  ;;  %v937_v10 = vmul.f32 %v801_v63, %v801_v63  ;;  %v359_v2 = vpop.f32.mrf.mxu0 }
  0xcf   : > { %v478_v3 = vpop.f32.mrf.mxu1  ;;  %v873_v4 = vadd.f32 %v872_v0, %v871_v58 }
  0xd0   : > { %v975_v5 = vsel %vm826_vm1, %v937_v10, 0.0  ;;  %v479_v7 = vadd.f32 %v478_v3, %v359_v2 }
  0xd1   : > { %v976_v28 = vadd.f32 %v975_v5, %v974_v51 }
  0xd3   : > { %v722_v1 = vpop.f32.mrf.mxu2 }
  0xd4   : > { %v1566_v8 = vpop.f32.mrf.mxu3  ;;  %v802_v9 = vadd.f32 %v722_v1, %v479_v7 }
  0xd6   : > { %835 = vst.msk [vmem:[%s1455_s6 + $0x40] sm:$0xff] %vm826_vm1, %v802_v9  ;;  %v874_v11 = vsel %vm826_vm1, %v802_v9, 0.0  ;;  %v938_v13 = vmul.f32 %v802_v9, %v802_v9  ;;  %v362_v14 = vpop.f32.mrf.mxu0 }
  0xd7   : > { %v481_v15 = vpop.f32.mrf.mxu1  ;;  %v875_v16 = vadd.f32 %v874_v11, %v873_v4 }
  0xd8   : > { %v977_v17 = vsel %vm826_vm1, %v938_v13, 0.0  ;;  %v482_v18 = vadd.f32 %v481_v15, %v362_v14 }
  0xd9   : > { %v978_v19 = vadd.f32 %v977_v17, %v976_v28 }
  0xdb   : > { %v725_v21 = vpop.f32.mrf.mxu2 }
  0xdc   : > { %v1572_v20 = vpop.f32.mrf.mxu3  ;;  %v803_v23 = vadd.f32 %v725_v21, %v482_v18 }
  0xde   : > { %836 = vst.msk [vmem:[%s1455_s6 + $0x48] sm:$0xff] %vm826_vm1, %v803_v23  ;;  %v876_v27 = vsel %vm826_vm1, %v803_v23, 0.0  ;;  %v939_v29 = vmul.f32 %v803_v23, %v803_v23  ;;  %v365_v30 = vpop.f32.mrf.mxu0 }
  0xdf   : > { %v484_v31 = vpop.f32.mrf.mxu1  ;;  %v877_v22 = vadd.f32 %v876_v27, %v875_v16 }
  0xe0   : > { %v979_v32 = vsel %vm826_vm1, %v939_v29, 0.0  ;;  %v485_v33 = vadd.f32 %v484_v31, %v365_v30 }
  0xe1   : > { %v980_v34 = vadd.f32 %v979_v32, %v978_v19  ;;  %v527_v32 = vadd.f32 %v1566_v8, %v1450_v40  ;;  %v530_v40 = vadd.f32 %v1572_v20, %v1469_v47 }
  0xe3   : > { %v728_v36 = vpop.f32.mrf.mxu2 }
  0xe4   : > { %v1578_v35 = vpop.f32.mrf.mxu3  ;;  %v804_v38 = vadd.f32 %v728_v36, %v485_v33 }
  0xe5   : > { %v533_v47 = vadd.f32 %v1578_v35, %v1487_v62 }
  0xe6   : > { %837 = vst.msk [vmem:[%s1455_s6 + $0x50] sm:$0xff] %vm826_vm1, %v804_v38  ;;  %v878_v39 = vsel %vm826_vm1, %v804_v38, 0.0  ;;  %v940_v41 = vmul.f32 %v804_v38, %v804_v38  ;;  %v368_v42 = vpop.f32.mrf.mxu0 }
  0xe7   : > { %v487_v24 = vpop.f32.mrf.mxu1  ;;  %v879_v44 = vadd.f32 %v878_v39, %v877_v22 }
  0xe8   : > { %v981_v45 = vsel %vm826_vm1, %v940_v41, 0.0  ;;  %v488_v46 = vadd.f32 %v487_v24, %v368_v42 }
  0xe9   : > { %v982_v48 = vadd.f32 %v981_v45, %v980_v34 }
  0xeb   : > { %v731_v49 = vpop.f32.mrf.mxu2 }
  0xec   : > { %v1584_v43 = vpop.f32.mrf.mxu3  ;;  %v805_v52 = vadd.f32 %v731_v49, %v488_v46 }
  0xee   : > { %838 = vst.msk [vmem:[%s1455_s6 + $0x58] sm:$0xff] %vm826_vm1, %v805_v52  ;;  %v880_v53 = vsel %vm826_vm1, %v805_v52, 0.0  ;;  %v941_v54 = vmul.f32 %v805_v52, %v805_v52  ;;  %v371_v6 = vpop.f32.mrf.mxu0 }
  0xef   : > { %v490_v55 = vpop.f32.mrf.mxu1  ;;  %v881_v56 = vadd.f32 %v880_v53, %v879_v44 }
  0xf0   : > { %v983_v57 = vsel %vm826_vm1, %v941_v54, 0.0  ;;  %v491_v58 = vadd.f32 %v490_v55, %v371_v6 }
  0xf1   : > { %v984_v59 = vadd.f32 %v983_v57, %v982_v48  ;;  %v536_v57 = vadd.f32 %v1584_v43, %v1504_v12 }
  0xf3   : > { %v734_v51 = vpop.f32.mrf.mxu2 }
  0xf4   : > { %v1590_v26 = vpop.f32.mrf.mxu3  ;;  %v806_v61 = vadd.f32 %v734_v51, %v491_v58 }
  0xf6   : > { %839 = vst.msk [vmem:[%s1455_s6 + $0x60] sm:$0xff] %vm826_vm1, %v806_v61  ;;  %v882_v63 = vsel %vm826_vm1, %v806_v61, 0.0  ;;  %v942_v0 = vmul.f32 %v806_v61, %v806_v61  ;;  %v374_v10 = vpop.f32.mrf.mxu0 }
  0xf7   : > { %v493_v2 = vpop.f32.mrf.mxu1  ;;  %v1595_v3 = vadd.f32 %v882_v63, %v881_v56 }
  0xf8   : > { %v985_v4 = vsel %vm826_vm1, %v942_v0, 0.0  ;;  %v494_v5 = vadd.f32 %v493_v2, %v374_v10  ;;  %v539_v0 = vadd.f32 %v1590_v26, %v1518_v25 }
  0xf9   : > { %v1598_v7 = vadd.f32 %v985_v4, %v984_v59 }
  0xfb   : > { %v737_v1 = vpop.f32.mrf.mxu2 }
  0xfc   : > { %v1600_v28 = vpop.f32.mrf.mxu3  ;;  %v1602_v9 = vadd.f32 %v737_v1, %v494_v5 }
  0xfe   : > { %840 = vst.msk [vmem:[%s1455_s6 + $0x68] sm:$0xff] %vm826_vm1, %v1602_v9  ;;  %v377_v11 = vpop.f32.mrf.mxu0  ;;  %v943_v4 = vmul.f32 %v1602_v9, %v1602_v9  ;;  %v884_v25 = vsel %vm826_vm1, %v1602_v9, 0.0 }
  0xff   : > { %v496_v13 = vpop.f32.mrf.mxu1 }
 0x100   : > { %v497_v14 = vadd.f32 %v496_v13, %v377_v11  ;;  %v542_v13 = vadd.f32 %v1600_v28, %v1532_v37 }
 0x103   : > { %v740_v16 = vpop.f32.mrf.mxu2 }
 0x104   : > { %v1607_v15 = vpop.f32.mrf.mxu3  ;;  %v1609_v17 = vadd.f32 %v740_v16, %v497_v14  ;;  %v987_v14 = vsel %vm826_vm1, %v943_v4, 0.0 }
 0x106   : > { %841 = vst.msk [vmem:[%s1455_s6 + $0x70] sm:$0xff] %vm826_vm1, %v1609_v17  ;;  %v380_v18 = vpop.f32.mrf.mxu0  ;;  %v944_v11 = vmul.f32 %v1609_v17, %v1609_v17  ;;  %v886_v16 = vsel %vm826_vm1, %v1609_v17, 0.0  ;;  %v988_v17 = vadd.f32 %v987_v14, %v1598_v7 }
 0x107   : > { %v499_v19 = vpop.f32.mrf.mxu1 }
 0x108   : > { %v500_v21 = vadd.f32 %v499_v19, %v380_v18  ;;  %v885_v19 = vadd.f32 %v884_v25, %v1595_v3 }
 0x10b   : > { %v743_v27 = vpop.f32.mrf.mxu2 }
 0x10c   : > { %v1614_v23 = vpop.f32.mrf.mxu3  ;;  %v1616_v29 = vadd.f32 %v743_v27, %v500_v21  ;;  %v989_v21 = vsel %vm826_vm1, %v944_v11, 0.0 }
 0x10e   : > { %842 = vst.msk [vmem:[%s1455_s6 + $0x78] sm:$0xff] %vm826_vm1, %v1616_v29  ;;  %v383_v30 = vpop.f32.mrf.mxu0  ;;  %v945_v18 = vmul.f32 %v1616_v29, %v1616_v29  ;;  %v888_v9 = vsel %vm826_vm1, %v1616_v29, 0.0 }
 0x10f   : > { %v502_v31 = vpop.f32.mrf.mxu1 }
 0x110   : > { %v503_v22 = vadd.f32 %v502_v31, %v383_v30 }
 0x113   : > { %v746_v33 = vpop.f32.mrf.mxu2 }
 0x114   : > { %v770_v34 = vpop.f32.mrf.mxu3  ;;  %v1623_v36 = vadd.f32 %v746_v33, %v503_v22  ;;  %v887_v22 = vadd.f32 %v886_v16, %v885_v19 }
 0x115   : > { %v1625_v38 = vadd.f32 %v770_v34, %v527_v32  ;;  %v991_v32 = vsel %vm826_vm1, %v945_v18, 0.0 }
 0x116   : > { %843 = vst.msk [vmem:[%s1455_s6 + $0x80] sm:$0xff] %vm826_vm1, %v1623_v36  ;;  %v386_v39 = vpop.f32.mrf.mxu0  ;;  %v946_v37 = vmul.f32 %v1623_v36, %v1623_v36  ;;  %v890_v3 = vsel %vm826_vm1, %v1623_v36, 0.0 }
 0x117   : > { %v505_v41 = vpop.f32.mrf.mxu1  ;;  %851 = vst.msk [vmem:[%s1455_s6 + $0xc0] sm:$0xff] %vm826_vm1, %v1625_v38 }
 0x118   : > { %v506_v42 = vadd.f32 %v505_v41, %v386_v39  ;;  %v990_v39 = vadd.f32 %v989_v21, %v988_v17  ;;  %v889_v41 = vadd.f32 %v888_v9, %v887_v22  ;;  %v993_v7 = vsel %vm826_vm1, %v946_v37, 0.0 }
 0x11a   : > { %v992_v36 = vadd.f32 %v991_v32, %v990_v39  ;;  %v906_v32 = vsel %vm826_vm1, %v1625_v38, 0.0 }
 0x11b   : > { %v749_v8 = vpop.f32.mrf.mxu2 }
 0x11c   : > { %v773_v24 = vpop.f32.mrf.mxu3  ;;  %v1635_v44 = vadd.f32 %v749_v8, %v506_v42 }
 0x11d   : > { %v1637_v45 = vadd.f32 %v773_v24, %v530_v40  ;;  %v891_v24 = vadd.f32 %v890_v3, %v889_v41 }
 0x11e   : > { %844 = vst.msk [vmem:[%s1455_s6 + $0x88] sm:$0xff] %vm826_vm1, %v1635_v44  ;;  %v389_v46 = vpop.f32.mrf.mxu0  ;;  %v947_v33 = vmul.f32 %v1635_v44, %v1635_v44  ;;  %v892_v40 = vsel %vm826_vm1, %v1635_v44, 0.0 }
 0x11f   : > { %v508_v48 = vpop.f32.mrf.mxu1  ;;  %852 = vst.msk [vmem:[%s1455_s6 + $0xc8] sm:$0xff] %vm826_vm1, %v1637_v45  ;;  %v955_v3 = vmul.f32 %v1637_v45, %v1637_v45  ;;  %v908_v41 = vsel %vm826_vm1, %v1637_v45, 0.0 }
 0x120   : > { %v509_v49 = vadd.f32 %v508_v48, %v389_v46  ;;  %v545_v46 = vadd.f32 %v1607_v15, %v1546_v50  ;;  %v995_v48 = vsel %vm826_vm1, %v947_v33, 0.0 }
 0x123   : > { %v752_v20 = vpop.f32.mrf.mxu2 }
 0x124   : > { %v776_v52 = vpop.f32.mrf.mxu3  ;;  %v812_v53 = vadd.f32 %v752_v20, %v509_v49  ;;  %v994_v20 = vadd.f32 %v993_v7, %v992_v36 }
 0x125   : > { %v1647_v54 = vadd.f32 %v776_v52, %v533_v47  ;;  %v893_v52 = vadd.f32 %v892_v40, %v891_v24 }
 0x126   : > { %845 = vst.msk [vmem:[%s1455_s6 + $0x90] sm:$0xff] %vm826_vm1, %v812_v53  ;;  %v392_v6 = vpop.f32.mrf.mxu0  ;;  %v948_v42 = vmul.f32 %v812_v53, %v812_v53  ;;  %v894_v49 = vsel %vm826_vm1, %v812_v53, 0.0  ;;  %v996_v50 = vadd.f32 %v995_v48, %v994_v20 }
 0x127   : > { %v511_v55 = vpop.f32.mrf.mxu1  ;;  %853 = vst.msk [vmem:[%s1455_s6 + $0xd0] sm:$0xff] %vm826_vm1, %v1647_v54  ;;  %v895_v15 = vadd.f32 %v894_v49, %v893_v52 }
 0x128   : > { %v512_v56 = vadd.f32 %v511_v55, %v392_v6  ;;  %v997_v6 = vsel %vm826_vm1, %v948_v42, 0.0  ;;  %v956_v42 = vmul.f32 %v1647_v54, %v1647_v54 }
 0x12a   : > { %v1013_v48 = vsel %vm826_vm1, %v956_v42, 0.0 }
 0x12b   : > { %v755_v58 = vpop.f32.mrf.mxu2 }
 0x12c   : > { %v779_v62 = vpop.f32.mrf.mxu3  ;;  %v813_v35 = vadd.f32 %v755_v58, %v512_v56 }
 0x12d   : > { %v1656_v59 = vadd.f32 %v779_v62, %v536_v57 }
 0x12e   : > { %846 = vst.msk [vmem:[%s1455_s6 + $0x98] sm:$0xff] %vm826_vm1, %v813_v35  ;;  %v395_v51 = vpop.f32.mrf.mxu0  ;;  %v949_v47 = vmul.f32 %v813_v35, %v813_v35  ;;  %v896_v44 = vsel %vm826_vm1, %v813_v35, 0.0 }
 0x12f   : > { %v514_v61 = vpop.f32.mrf.mxu1  ;;  %854 = vst.msk [vmem:[%s1455_s6 + $0xd8] sm:$0xff] %vm826_vm1, %v1656_v59  ;;  %v957_v36 = vmul.f32 %v1656_v59, %v1656_v59  ;;  %v912_v45 = vsel %vm826_vm1, %v1656_v59, 0.0 }
 0x130   : > { %v515_v63 = vadd.f32 %v514_v61, %v395_v51  ;;  %v999_v51 = vsel %vm826_vm1, %v949_v47, 0.0 }
 0x131   : > { %v1015_v52 = vsel %vm826_vm1, %v957_v36, 0.0 }
 0x133   : > { %v758_v10 = vpop.f32.mrf.mxu2 }
 0x134   : > { %v782_v12 = vpop.f32.mrf.mxu3  ;;  %v814_v43 = vadd.f32 %v758_v10, %v515_v63  ;;  %v998_v10 = vadd.f32 %v997_v6, %v996_v50 }
 0x135   : > { %v1665_v2 = vadd.f32 %v782_v12, %v539_v0  ;;  %v897_v12 = vadd.f32 %v896_v44, %v895_v15 }
 0x136   : > { %847 = vst.msk [vmem:[%s1455_s6 + $0xa0] sm:$0xff] %vm826_vm1, %v814_v43  ;;  %v398_v5 = vpop.f32.mrf.mxu0  ;;  %v950_v57 = vmul.f32 %v814_v43, %v814_v43  ;;  %v898_v53 = vsel %vm826_vm1, %v814_v43, 0.0  ;;  %v1000_v11 = vadd.f32 %v999_v51, %v998_v10  ;;  %v548_v43 = vadd.f32 %v1614_v23, %v1560_v60 }
 0x137   : > { %v517_v1 = vpop.f32.mrf.mxu1  ;;  %855 = vst.msk [vmem:[%s1455_s6 + $0xe0] sm:$0xff] %vm826_vm1, %v1665_v2  ;;  %v899_v25 = vadd.f32 %v898_v53, %v897_v12  ;;  %v958_v49 = vmul.f32 %v1665_v2, %v1665_v2 }
 0x138   : > { %v518_v26 = vadd.f32 %v517_v1, %v398_v5  ;;  %v1001_v35 = vsel %vm826_vm1, %v950_v57, 0.0 }
 0x139   : > { %v1002_v14 = vadd.f32 %v1001_v35, %v1000_v11  ;;  %v1017_v44 = vsel %vm826_vm1, %v958_v49, 0.0 }
 0x13b   : > { %v761_v27 = vpop.f32.mrf.mxu2 }
 0x13c   : > { %v785_v30 = vpop.f32.mrf.mxu3  ;;  %v815_v28 = vadd.f32 %v761_v27, %v518_v26 }
 0x13d   : > { %v1691_v31 = vadd.f32 %v785_v30, %v542_v13 }
 0x13e   : > { %848 = vst.msk [vmem:[%s1455_s6 + $0xa8] sm:$0xff] %vm826_vm1, %v815_v28  ;;  %v401_v29 = vpop.f32.mrf.mxu0  ;;  %v951_v61 = vmul.f32 %v815_v28, %v815_v28  ;;  %v900_v4 = vsel %vm826_vm1, %v815_v28, 0.0  ;;  %v954_v28 = vmul.f32 %v1625_v38, %v1625_v38  ;;  %v910_v38 = vsel %vm826_vm1, %v1647_v54, 0.0 }
 0x13f   : > { %v520_v34 = vpop.f32.mrf.mxu1  ;;  %856 = vst.msk [vmem:[%s1455_s6 + $0xe8] sm:$0xff] %vm826_vm1, %v1691_v31  ;;  %v901_v16 = vadd.f32 %v900_v4, %v899_v25  ;;  %v914_v54 = vsel %vm826_vm1, %v1665_v2, 0.0  ;;  %v959_v6 = vmul.f32 %v1691_v31, %v1691_v31  ;;  %v916_v59 = vsel %vm826_vm1, %v1691_v31, 0.0 }
 0x140   : > { %v521_v8 = vadd.f32 %v520_v34, %v401_v29  ;;  %v1003_v26 = vsel %vm826_vm1, %v951_v61, 0.0  ;;  %v1009_v39 = vsel %vm826_vm1, %v954_v28, 0.0 }
 0x141   : > { %v1004_v9 = vadd.f32 %v1003_v26, %v1002_v14  ;;  %v1019_v15 = vsel %vm826_vm1, %v959_v6, 0.0 }
 0x143   : > { %v764_v55 = vpop.f32.mrf.mxu2 }
 0x144   : > { %v788_v56 = vpop.f32.mrf.mxu3  ;;  %v816_v58 = vadd.f32 %v764_v55, %v521_v8  ;;  %v1011_v8 = vsel %vm826_vm1, %v955_v3, 0.0 }
 0x145   : > { %v1713_v62 = vadd.f32 %v788_v56, %v545_v46 }
 0x146   : > { %849 = vst.msk [vmem:[%s1455_s6 + $0xb0] sm:$0xff] %vm826_vm1, %v816_v58  ;;  %v404_v63 = vpop.f32.mrf.mxu0  ;;  %v952_v5 = vmul.f32 %v816_v58, %v816_v58  ;;  %v902_v13 = vsel %vm826_vm1, %v816_v58, 0.0 }
 0x147   : > { %v523_v0 = vpop.f32.mrf.mxu1  ;;  %857 = vst.msk [vmem:[%s1455_s6 + $0xf0] sm:$0xff] %vm826_vm1, %v1713_v62  ;;  %v903_v37 = vadd.f32 %v902_v13, %v901_v16  ;;  %v960_v57 = vmul.f32 %v1713_v62, %v1713_v62  ;;  %v918_v2 = vsel %vm826_vm1, %v1713_v62, 0.0 }
 0x148   : > { %v524_v1 = vadd.f32 %v523_v0, %v404_v63  ;;  %v1005_v21 = vsel %vm826_vm1, %v952_v5, 0.0 }
 0x149   : > { %v1006_v17 = vadd.f32 %v1005_v21, %v1004_v9  ;;  %v1021_v63 = vsel %vm826_vm1, %v960_v57, 0.0 }
 0x14b   : > { %v767_v18 = vpop.f32.mrf.mxu2 }
 0x14c   : > { %v791_v19 = vpop.f32.mrf.mxu3  ;;  %v817_v27 = vadd.f32 %v767_v18, %v524_v1 }
 0x14d   : > { %v825_v30 = vadd.f32 %v791_v19, %v548_v43 }
 0x14e   : > { %850 = vst.msk [vmem:[%s1455_s6 + $0xb8] sm:$0xff] %vm826_vm1, %v817_v27  ;;  %v904_v60 = vsel %vm826_vm1, %v817_v27, 0.0  ;;  %v953_v23 = vmul.f32 %v817_v27, %v817_v27 }
 0x14f   : > { %v905_v22 = vadd.f32 %v904_v60, %v903_v37  ;;  %858 = vst.msk [vmem:[%s1455_s6 + $0xf8] sm:$0xff] %vm826_vm1, %v825_v30  ;;  %v961_v51 = vmul.f32 %v825_v30, %v825_v30  ;;  %v920_v0 = vsel %vm826_vm1, %v825_v30, 0.0 }
 0x150   : > { %v1007_v33 = vsel %vm826_vm1, %v953_v23, 0.0 }
 0x151   : > { %v907_v29 = vadd.f32 %v906_v32, %v905_v22  ;;  %v1008_v34 = vadd.f32 %v1007_v33, %v1006_v17  ;;  %v1023_v12 = vsel %vm826_vm1, %v961_v51, 0.0 }
 0x153   : > { %v909_v7 = vadd.f32 %v908_v41, %v907_v29  ;;  %v1010_v40 = vadd.f32 %v1009_v39, %v1008_v34 }
 0x155   : > { %v911_v24 = vadd.f32 %v910_v38, %v909_v7  ;;  %v1012_v46 = vadd.f32 %v1011_v8, %v1010_v40 }
 0x157   : > { %v1014_v47 = vadd.f32 %v1013_v48, %v1012_v46  ;;  %v913_v20 = vadd.f32 %v912_v45, %v911_v24 }
 0x159   : > { %v915_v55 = vadd.f32 %v914_v54, %v913_v20  ;;  %v1016_v56 = vadd.f32 %v1015_v52, %v1014_v47 }
 0x15b   : > { %v917_v58 = vadd.f32 %v916_v59, %v915_v55  ;;  %v1018_v50 = vadd.f32 %v1017_v44, %v1016_v56 }
 0x15d   : > { %v919_v53 = vadd.f32 %v918_v2, %v917_v58  ;;  %v1020_v61 = vadd.f32 %v1019_v15, %v1018_v50 }
 0x15f   : > { %v921_v10 = vadd.f32 %v920_v0, %v919_v53  ;;  %v1022_v31 = vadd.f32 %v1021_v63, %v1020_v61 }
 0x161   : > { %v922_v35 = vrot.slane %v921_v10, 4  ;;  %v1024_v4 = vadd.f32 %v1023_v12, %v1022_v31 }
 0x163   : > { %v923_v5 = vadd.f32 %v922_v35, %v921_v10  ;;  %v1025_v1 = vrot.slane %v1024_v4, 4 }
 0x165   : > { %v924_v11 = vrot.slane %v923_v5, 2  ;;  %v1026_v25 = vadd.f32 %v1025_v1, %v1024_v4 }
 0x167   : > { %v925_v43 = vadd.f32 %v924_v11, %v923_v5  ;;  %v1027_v62 = vrot.slane %v1026_v25, 2 }
 0x169   : > { %v926_v26 = vrot.slane %v925_v43, 1  ;;  %v1028_v13 = vadd.f32 %v1027_v62, %v1026_v25 }
 0x16b   : > { %v927_v14 = vadd.f32 %v926_v26, %v925_v43  ;;  %v1029_v16 = vrot.slane %v1028_v13, 1 }
 0x16d   : > { %929 = vst.msk [vmem:[%s181_s10] sm:$0x1] %vm928_vm2, %v927_v14  ;;  %v1030_v18 = vadd.f32 %v1029_v16, %v1028_v13 }
 0x16f   : > { %1031 = vst.msk [vmem:[%s181_s10 + $0x1] sm:$0x1] %vm928_vm2, %v1030_v18 }
 0x170 PF: > { %s14_s12 = sadd.s32 1, %s1251_s12  }
 0x171   : > { %p11_p4 = scmp.ge.s32.totalorder %s14_s12, 4  }
 0x173   :  { %13 = sbr.rel (!%p11_p4) target bundleno = 1 (0x1), region = 72 }

</bundles_post_ra>
